<compile_context>
chip_gen: v5e
topology: v5e:2x2
jax: 0.10.0
libtpu: 0.0.40
codegen_flags: <defaults>
</compile_context>

<pallas_src>
import functools

import jax
import jax.numpy as jnp
from jax.experimental import pallas as pl
from jax.experimental.pallas import tpu as pltpu

# ---------------- configuration (module hyper-parameters) ----------------
N_SPACE = 16
NB_CHANNELS_IN = 4
CLASSIFIER_TYPE = "mlp"      # 'fc' or 'mlp'
NB_CLASSES = 10
NB_HIDDEN_UNITS = 32
NB_L_MLP = 2
DROPOUT_P_MLP = 0.5          # identity in eval mode
AVG_KER_SIZE = 2             # F.avg_pool2d(x, k, stride=1) as in the PyTorch forward
BN_EPS = 1e-5

_N_OUT = N_SPACE - AVG_KER_SIZE + 1 if AVG_KER_SIZE > 1 else N_SPACE
IN_PLANES = NB_CHANNELS_IN * _N_OUT * _N_OUT          # 4 * 15 * 15 = 900 (MLP "in" dim)
FOLDED_DIN = NB_CHANNELS_IN * N_SPACE * N_SPACE       # 4 * 16 * 16 = 1024 (kernel K dim)

_VMEM = pl.BlockSpec(memory_space=pltpu.MemorySpace.VMEM)


# ---------------- the single fused Pallas kernel ----------------
def fused_mlp_kernel(*refs, n_layers, relu_hidden):
    """out = MLP(x).  refs = (x, W_1..W_L, b_1..b_L, out).

    All matmuls chain through VMEM-resident values; only the final result is stored.
    ReLU follows every Linear except the last one (mlp mode); 'fc' has no ReLU.
    """
    x_ref = refs[0]
    w_refs = refs[1:1 + n_layers]
    b_refs = refs[1 + n_layers:1 + 2 * n_layers]
    o_ref = refs[1 + 2 * n_layers]

    h = x_ref[...]
    for i in range(n_layers):                       # static Python unroll (<= 3 layers)
        h = jnp.dot(h, w_refs[i][...], preferred_element_type=jnp.float32)
        h = h + b_refs[i][...]                      # (1, Dout) broadcast over batch
        if relu_hidden and i != n_layers - 1:
            h = jnp.maximum(h, 0.0)
    o_ref[...] = h


def fused_mlp(x_flat, ws, bs):
    n_layers = len(ws)
    B = x_flat.shape[0]
    d_out = ws[-1].shape[1]
    args = [x_flat] + list(ws) + [b.reshape(1, -1) for b in bs]
    kernel = functools.partial(
        fused_mlp_kernel,
        n_layers=n_layers,
        relu_hidden=(CLASSIFIER_TYPE == "mlp"),
    )
    return pl.pallas_call(
        kernel,
        out_shape=jax.ShapeDtypeStruct((B, d_out), jnp.float32),
        in_specs=[_VMEM] * len(args),
        out_specs=_VMEM,
    )(*args)


# ---------------- fold BN(eval) + avg_pool(stride=1) + flatten into Linear #1 ----------------
def fold_first_layer(w1, b1, scale, shift):
    """Exact fold: BN affine, k x k stride-1 average pool and torch-.view flatten are
    linear, so   out1 = x.reshape(B, C*H*W) @ W_eff + b_eff.

    w1: [C*n*n, hidden] with the "in" index in torch .view order (c, i, j).
    """
    C, H, k, n = NB_CHANNELS_IN, N_SPACE, AVG_KER_SIZE, _N_OUT
    hidden = w1.shape[1]
    w1r = w1.reshape(C, n, n, hidden)

    if k > 1:
        # Transposed pooling applied to the weights:
        #   W_acc[c, h, w, :] = (1/k^2) * sum_{di,dj} w1r[c, h-di, w-dj, :]  (zeros OOB)
        acc = jnp.zeros((C, H, H, hidden), jnp.float32)
        for di in range(k):
            for dj in range(k):
                acc = acc.at[:, di:di + n, dj:dj + n, :].add(w1r)
        acc = acc * (1.0 / float(k * k))
    else:
        acc = w1r

    w_eff = (acc * scale[:, None, None, None]).reshape(C * H * H, hidden)
    # Pooling of a per-channel constant (the BN shift) is the same constant, so:
    b_eff = b1 + jnp.einsum("c,cijd->d", shift, w1r)
    return w_eff, b_eff


# ---------------- parameter construction (deterministic) ----------------
def init_params(key):
    params = {}
    # BatchNorm2d parameters / running buffers.
    k0, k1, k2, k3, key = jax.random.split(key, 5)
    params["bn_gamma"] = 1.0 + 0.1 * jax.random.normal(k0, (NB_CHANNELS_IN,), jnp.float32)
    params["bn_beta"] = 0.1 * jax.random.normal(k1, (NB_CHANNELS_IN,), jnp.float32)
    params["bn_mean"] = 0.1 * jax.random.normal(k2, (NB_CHANNELS_IN,), jnp.float32)
    params["bn_var"] = 1.0 + 0.1 * jax.random.uniform(k3, (NB_CHANNELS_IN,), jnp.float32)

    # Linear layer dims (PyTorch weight layout is [out, in]; we store [in, out]).
    if CLASSIFIER_TYPE == "fc":
        dims = [(IN_PLANES, NB_CLASSES)]
    else:
        dims = [(IN_PLANES, NB_HIDDEN_UNITS)]
        for _ in range(NB_L_MLP - 1):
            dims.append((NB_HIDDEN_UNITS, NB_HIDDEN_UNITS))
        dims.append((NB_HIDDEN_UNITS, NB_CLASSES))

    weights, biases = [], []
    for (din, dout) in dims:
        kw, kb, key = jax.random.split(key, 3)
        bound = 1.0 / jnp.sqrt(din)
        weights.append(jax.random.uniform(kw, (din, dout), jnp.float32, -bound, bound))
        biases.append(jax.random.uniform(kb, (dout,), jnp.float32, -bound, bound))
    params["weights"] = weights
    params["biases"] = biases
    return params


# ---------------- forward pass ----------------
def classifier_forward(x, params):
    # Fold BN (eval mode) into per-channel scale/shift (tiny glue, C elements).
    scale = params["bn_gamma"] / jnp.sqrt(params["bn_var"] + BN_EPS)
    shift = params["bn_beta"] - params["bn_mean"] * scale

    ws, bs = params["weights"], params["biases"]
    # Fold BN affine + pool + flatten into the first Linear (exact, done once in glue).
    w_eff, b_eff = fold_first_layer(ws[0], bs[0], scale, shift)

    x_flat = x.reshape(x.shape[0], -1)              # [B, C*H*W] = [B, 1024], lane-dense
    eff_ws = [w_eff] + list(ws[1:])
    eff_bs = [b_eff] + list(bs[1:])
    return fused_mlp(x_flat, eff_ws, eff_bs)        # single pallas_call


# ---------------- pure-JAX reference (un-folded, for sanity check) ----------------
def reference_forward(x, params):
    scale = params["bn_gamma"] / jnp.sqrt(params["bn_var"] + BN_EPS)
    shift = params["bn_beta"] - params["bn_mean"] * scale
    h = x * scale[None, :, None, None] + shift[None, :, None, None]
    if AVG_KER_SIZE > 1:
        k = AVG_KER_SIZE
        n = h.shape[-1] - k + 1
        acc = jnp.zeros(h.shape[:2] + (n, n), jnp.float32)
        for di in range(k):
            for dj in range(k):
                acc = acc + h[:, :, di:di + n, dj:dj + n]
        h = acc / (k * k)
    h = h.reshape(h.shape[0], -1)
    ws, bs = params["weights"], params["biases"]
    for i in range(len(ws)):
        h = h @ ws[i] + bs[i]
        if i != len(ws) - 1 and CLASSIFIER_TYPE == "mlp":
            h = jnp.maximum(h, 0.0)
    return h


if __name__ == "__main__":
    key = jax.random.PRNGKey(0)
    kx, kp = jax.random.split(key)
    x = jax.random.normal(kx, (2, NB_CHANNELS_IN, N_SPACE, N_SPACE), jnp.float32)
    params = init_params(kp)

    fwd = jax.jit(classifier_forward)
    out = jax.block_until_ready(fwd(x, params))

    ref = reference_forward(x, params)
    assert out.shape == (2, NB_CLASSES), out.shape
    assert jnp.allclose(out, ref, atol=5e-4, rtol=5e-4), (
        float(jnp.max(jnp.abs(out - ref))))

    print("KERNEL_OK")
</pallas_src>

<mosaic_0001>
module attributes {stable_mosaic.version = 11 : i64} {
  func.func @fused_mlp_kernel(%arg0: memref<2x1024xf32, #tpu.memory_space<vmem>>, %arg1: memref<1024x32xf32, #tpu.memory_space<vmem>>, %arg2: memref<32x32xf32, #tpu.memory_space<vmem>>, %arg3: memref<32x10xf32, #tpu.memory_space<vmem>>, %arg4: memref<1x32xf32, #tpu.memory_space<vmem>>, %arg5: memref<1x32xf32, #tpu.memory_space<vmem>>, %arg6: memref<1x10xf32, #tpu.memory_space<vmem>>, %arg7: memref<2x10xf32, #tpu.memory_space<vmem>>) attributes {dimension_semantics = [], scalar_prefetch = 0 : i64, scratch_operands = 0 : i64, tpu.core_type = #tpu.core_type<tc>} {
    %c0 = arith.constant 0 : index
    %c0_0 = arith.constant 0 : index
    %0 = vector.load %arg0[%c0, %c0_0] : memref<2x1024xf32, #tpu.memory_space<vmem>>, vector<2x1024xf32>
    %c0_1 = arith.constant 0 : index
    %c0_2 = arith.constant 0 : index
    %1 = vector.load %arg1[%c0_1, %c0_2] : memref<1024x32xf32, #tpu.memory_space<vmem>>, vector<1024x32xf32>
    %cst = arith.constant dense<0.000000e+00> : vector<2x32xf32>
    %2 = tpu.matmul %0, %1, %cst {dimension_numbers = #tpu.dot_dimension_numbers<[1], [0], [0], [1], [0, 0, 1, 1], [], []>} : vector<2x1024xf32>, vector<1024x32xf32>, vector<2x32xf32> -> vector<2x32xf32>
    %c0_3 = arith.constant 0 : index
    %c0_4 = arith.constant 0 : index
    %3 = vector.load %arg4[%c0_3, %c0_4] : memref<1x32xf32, #tpu.memory_space<vmem>>, vector<1x32xf32>
    %4 = vector.broadcast %3 : vector<1x32xf32> to vector<2x32xf32>
    %5 = arith.addf %2, %4 : vector<2x32xf32>
    %cst_5 = arith.constant 0.000000e+00 : f32
    %6 = vector.broadcast %cst_5 : f32 to vector<2x32xf32>
    %7 = arith.maximumf %5, %6 : vector<2x32xf32>
    %c0_6 = arith.constant 0 : index
    %c0_7 = arith.constant 0 : index
    %8 = vector.load %arg2[%c0_6, %c0_7] : memref<32x32xf32, #tpu.memory_space<vmem>>, vector<32x32xf32>
    %cst_8 = arith.constant dense<0.000000e+00> : vector<2x32xf32>
    %9 = tpu.matmul %7, %8, %cst_8 {dimension_numbers = #tpu.dot_dimension_numbers<[1], [0], [0], [1], [0, 0, 1, 1], [], []>} : vector<2x32xf32>, vector<32x32xf32>, vector<2x32xf32> -> vector<2x32xf32>
    %c0_9 = arith.constant 0 : index
    %c0_10 = arith.constant 0 : index
    %10 = vector.load %arg5[%c0_9, %c0_10] : memref<1x32xf32, #tpu.memory_space<vmem>>, vector<1x32xf32>
    %11 = vector.broadcast %10 : vector<1x32xf32> to vector<2x32xf32>
    %12 = arith.addf %9, %11 : vector<2x32xf32>
    %cst_11 = arith.constant 0.000000e+00 : f32
    %13 = vector.broadcast %cst_11 : f32 to vector<2x32xf32>
    %14 = arith.maximumf %12, %13 : vector<2x32xf32>
    %c0_12 = arith.constant 0 : index
    %c0_13 = arith.constant 0 : index
    %15 = vector.load %arg3[%c0_12, %c0_13] : memref<32x10xf32, #tpu.memory_space<vmem>>, vector<32x10xf32>
    %cst_14 = arith.constant dense<0.000000e+00> : vector<2x10xf32>
    %16 = tpu.matmul %14, %15, %cst_14 {dimension_numbers = #tpu.dot_dimension_numbers<[1], [0], [0], [1], [0, 0, 1, 1], [], []>} : vector<2x32xf32>, vector<32x10xf32>, vector<2x10xf32> -> vector<2x10xf32>
    %c0_15 = arith.constant 0 : index
    %c0_16 = arith.constant 0 : index
    %17 = vector.load %arg6[%c0_15, %c0_16] : memref<1x10xf32, #tpu.memory_space<vmem>>, vector<1x10xf32>
    %18 = vector.broadcast %17 : vector<1x10xf32> to vector<2x10xf32>
    %19 = arith.addf %16, %18 : vector<2x10xf32>
    %c0_17 = arith.constant 0 : index
    %c0_18 = arith.constant 0 : index
    %20 = vector.load %arg7[%c0_17, %c0_18] : memref<2x10xf32, #tpu.memory_space<vmem>>, vector<2x10xf32>
    tpu.vector_store %arg7[%c0_17, %c0_18], %19 {strides = array<i32>} : memref<2x10xf32, #tpu.memory_space<vmem>>, vector<2x10xf32>,
    return
  }
}

</mosaic_0001>

<bundles_post_ra>
// kernel: classifier_forward.1
= control target key start
LH: loop header
LB: loop body
LE: loop exit
PB: predicated region body
PF: predicated region fallthrough
CT: control target
= control target key end

     0   :  { %s924_s0 = inlined_call_operand.vmem [shape: f32[2,1024], index: 0, kind: input, shape index: {}]   ;;  %s925_s1 = inlined_call_operand.vmem [shape: f32[1024,32], index: 1, kind: input, shape index: {}]   ;;  %s926_s2 = inlined_call_operand.vmem [shape: f32[32,32], index: 2, kind: input, shape index: {}]   ;;  %s927_s3 = inlined_call_operand.vmem [shape: f32[32,10], index: 3, kind: input, shape index: {}]   ;;  %s928_s4 = inlined_call_operand.vmem [shape: f32[1,32], index: 4, kind: input, shape index: {}]   ;;  %s929_s5 = inlined_call_operand.vmem [shape: f32[1,32], index: 5, kind: input, shape index: {}]   ;;  %s930_s6 = inlined_call_operand.vmem [shape: f32[1,10], index: 6, kind: input, shape index: {}]   ;;  %s931_s7 = inlined_call_operand.hbm [shape: f32[2,10], index: 7, kind: output, shape index: {}]  }
   0x1   :  { %v76_v0 = vld [vmem:[%s925_s1 + $0x178] sm:$0xff]  ;;  %v75_v2 = vld [vmem:[%s925_s1 + $0x170] sm:$0xff]  ;;  %v74_v6 = vld [vmem:[%s925_s1 + $0x168] sm:$0xff] }
   0x2   :  { %v44_v1 = vld [vmem:[%s925_s1 + $0x78] sm:$0xff]  ;;  %222 = vmatpush.msra.mxu2 %v76_v0  ;;  %v43_v4 = vld [vmem:[%s925_s1 + $0x70] sm:$0xff]  ;;  %v42_v8 = vld [vmem:[%s925_s1 + $0x68] sm:$0xff] }
   0x3   :  { %182 = vmatpush.msra.mxu0 %v44_v1  ;;  %v92_v3 = vld [vmem:[%s925_s1 + $0x1f8] sm:$0xff]  ;;  %v91_v7 = vld [vmem:[%s925_s1 + $0x1f0] sm:$0xff]  ;;  %v90_v10 = vld [vmem:[%s925_s1 + $0x1e8] sm:$0xff] }
   0x4   :  { %v60_v5 = vld [vmem:[%s925_s1 + $0xf8] sm:$0xff]  ;;  %242 = vmatpush.msra.mxu3 %v92_v3  ;;  %223 = vmatpush.msra.mxu2 %v75_v2  ;;  %v59_v9 = vld [vmem:[%s925_s1 + $0xf0] sm:$0xff]  ;;  %v73_v11 = vld [vmem:[%s925_s1 + $0x160] sm:$0xff] }
   0x5   :  { %202 = vmatpush.msra.mxu1 %v60_v5  ;;  %183 = vmatpush.msra.mxu0 %v43_v4  ;;  %v41_v12 = vld [vmem:[%s925_s1 + $0x60] sm:$0xff]  ;;  %v58_v13 = vld [vmem:[%s925_s1 + $0xe8] sm:$0xff]  ;;  %v72_v16 = vld [vmem:[%s925_s1 + $0x158] sm:$0xff] }
   0x6   :  { %243 = vmatpush.msra.mxu3 %v91_v7  ;;  %224 = vmatpush.msra.mxu2 %v74_v6  ;;  %v89_v14 = vld [vmem:[%s925_s1 + $0x1e0] sm:$0xff]  ;;  %v40_v17 = vld [vmem:[%s925_s1 + $0x58] sm:$0xff]  ;;  %v71_v20 = vld [vmem:[%s925_s1 + $0x150] sm:$0xff] }
   0x7   :  { %203 = vmatpush.msra.mxu1 %v59_v9  ;;  %184 = vmatpush.msra.mxu0 %v42_v8  ;;  %v57_v15 = vld [vmem:[%s925_s1 + $0xe0] sm:$0xff]  ;;  %v88_v18 = vld [vmem:[%s925_s1 + $0x1d8] sm:$0xff]  ;;  %v39_v21 = vld [vmem:[%s925_s1 + $0x50] sm:$0xff] }
   0x8   :  { %244 = vmatpush.msra.mxu3 %v90_v10  ;;  %225 = vmatpush.msra.mxu2 %v73_v11  ;;  %v56_v19 = vld [vmem:[%s925_s1 + $0xd8] sm:$0xff]  ;;  %v87_v22 = vld [vmem:[%s925_s1 + $0x1d0] sm:$0xff]  ;;  %v70_v24 = vld [vmem:[%s925_s1 + $0x148] sm:$0xff] }
   0x9   :  { %204 = vmatpush.msra.mxu1 %v58_v13  ;;  %185 = vmatpush.msra.mxu0 %v41_v12  ;;  %v55_v23 = vld [vmem:[%s925_s1 + $0xd0] sm:$0xff]  ;;  %v38_v25 = vld [vmem:[%s925_s1 + $0x48] sm:$0xff]  ;;  %v69_v28 = vld [vmem:[%s925_s1 + $0x140] sm:$0xff] }
   0xa   :  { %245 = vmatpush.msra.mxu3 %v89_v14  ;;  %226 = vmatpush.msra.mxu2 %v72_v16  ;;  %v86_v26 = vld [vmem:[%s925_s1 + $0x1c8] sm:$0xff]  ;;  %v37_v29 = vld [vmem:[%s925_s1 + $0x40] sm:$0xff]  ;;  %v68_v32 = vld [vmem:[%s925_s1 + $0x138] sm:$0xff] }
   0xb   :  { %205 = vmatpush.msra.mxu1 %v57_v15  ;;  %186 = vmatpush.msra.mxu0 %v40_v17  ;;  %v54_v27 = vld [vmem:[%s925_s1 + $0xc8] sm:$0xff]  ;;  %v85_v30 = vld [vmem:[%s925_s1 + $0x1c0] sm:$0xff]  ;;  %v36_v33 = vld [vmem:[%s925_s1 + $0x38] sm:$0xff] }
   0xc   :  { %246 = vmatpush.msra.mxu3 %v88_v18  ;;  %227 = vmatpush.msra.mxu2 %v71_v20  ;;  %v53_v31 = vld [vmem:[%s925_s1 + $0xc0] sm:$0xff]  ;;  %v84_v34 = vld [vmem:[%s925_s1 + $0x1b8] sm:$0xff]  ;;  %v67_v36 = vld [vmem:[%s925_s1 + $0x130] sm:$0xff] }
   0xd   :  { %206 = vmatpush.msra.mxu1 %v56_v19  ;;  %187 = vmatpush.msra.mxu0 %v39_v21  ;;  %v52_v35 = vld [vmem:[%s925_s1 + $0xb8] sm:$0xff]  ;;  %v35_v37 = vld [vmem:[%s925_s1 + $0x30] sm:$0xff]  ;;  %v66_v40 = vld [vmem:[%s925_s1 + $0x128] sm:$0xff] }
   0xe   :  { %247 = vmatpush.msra.mxu3 %v87_v22  ;;  %228 = vmatpush.msra.mxu2 %v70_v24  ;;  %v83_v38 = vld [vmem:[%s925_s1 + $0x1b0] sm:$0xff]  ;;  %v34_v41 = vld [vmem:[%s925_s1 + $0x28] sm:$0xff]  ;;  %v65_v44 = vld [vmem:[%s925_s1 + $0x120] sm:$0xff] }
   0xf   :  { %207 = vmatpush.msra.mxu1 %v55_v23  ;;  %188 = vmatpush.msra.mxu0 %v38_v25  ;;  %v51_v39 = vld [vmem:[%s925_s1 + $0xb0] sm:$0xff]  ;;  %v82_v42 = vld [vmem:[%s925_s1 + $0x1a8] sm:$0xff]  ;;  %v33_v45 = vld [vmem:[%s925_s1 + $0x20] sm:$0xff] }
  0x10   :  { %248 = vmatpush.msra.mxu3 %v86_v26  ;;  %229 = vmatpush.msra.mxu2 %v69_v28  ;;  %v50_v43 = vld [vmem:[%s925_s1 + $0xa8] sm:$0xff]  ;;  %v81_v46 = vld [vmem:[%s925_s1 + $0x1a0] sm:$0xff]  ;;  %v64_v48 = vld [vmem:[%s925_s1 + $0x118] sm:$0xff] }
  0x11   :  { %208 = vmatpush.msra.mxu1 %v54_v27  ;;  %189 = vmatpush.msra.mxu0 %v37_v29  ;;  %v49_v47 = vld [vmem:[%s925_s1 + $0xa0] sm:$0xff]  ;;  %v32_v49 = vld [vmem:[%s925_s1 + $0x18] sm:$0xff]  ;;  %v63_v52 = vld [vmem:[%s925_s1 + $0x110] sm:$0xff] }
  0x12   :  { %249 = vmatpush.msra.mxu3 %v85_v30  ;;  %230 = vmatpush.msra.mxu2 %v68_v32  ;;  %v80_v50 = vld [vmem:[%s925_s1 + $0x198] sm:$0xff]  ;;  %v31_v53 = vld [vmem:[%s925_s1 + $0x10] sm:$0xff]  ;;  %v62_v56 = vld [vmem:[%s925_s1 + $0x108] sm:$0xff] }
  0x13   :  { %209 = vmatpush.msra.mxu1 %v53_v31  ;;  %190 = vmatpush.msra.mxu0 %v36_v33  ;;  %v48_v51 = vld [vmem:[%s925_s1 + $0x98] sm:$0xff]  ;;  %v79_v54 = vld [vmem:[%s925_s1 + $0x190] sm:$0xff]  ;;  %v30_v57 = vld [vmem:[%s925_s1 + $0x8] sm:$0xff] }
  0x14   :  { %250 = vmatpush.msra.mxu3 %v84_v34  ;;  %231 = vmatpush.msra.mxu2 %v67_v36  ;;  %v47_v55 = vld [vmem:[%s925_s1 + $0x90] sm:$0xff]  ;;  %v78_v58 = vld [vmem:[%s925_s1 + $0x188] sm:$0xff]  ;;  %v61_v60 = vld [vmem:[%s925_s1 + $0x100] sm:$0xff] }
  0x15   :  { %210 = vmatpush.msra.mxu1 %v52_v35  ;;  %191 = vmatpush.msra.mxu0 %v35_v37  ;;  %v46_v59 = vld [vmem:[%s925_s1 + $0x88] sm:$0xff]  ;;  %v29_v61 = vld [vmem:[%s925_s1] sm:$0xff]  ;;  %v140_v62 = vld [vmem:[%s925_s1 + $0x378] sm:$0xff] }
  0x16   :  { %251 = vmatpush.msra.mxu3 %v83_v38  ;;  %232 = vmatpush.msra.mxu2 %v66_v40  ;;  %v77_v63 = vld [vmem:[%s925_s1 + $0x180] sm:$0xff]  ;;  %v108_v0 = vld [vmem:[%s925_s1 + $0x278] sm:$0xff]  ;;  %v139_v2 = vld [vmem:[%s925_s1 + $0x370] sm:$0xff] }
  0x17   :  { %211 = vmatpush.msra.mxu1 %v51_v39  ;;  %192 = vmatpush.msra.mxu0 %v34_v41  ;;  %v156_v1 = vld [vmem:[%s925_s1 + $0x3f8] sm:$0xff]  ;;  %v45_v3 = vld [vmem:[%s925_s1 + $0x80] sm:$0xff]  ;;  %v107_v4 = vld [vmem:[%s925_s1 + $0x270] sm:$0xff] }
  0x18   :  { %252 = vmatpush.msra.mxu3 %v82_v42  ;;  %233 = vmatpush.msra.mxu2 %v65_v44  ;;  %v124_v5 = vld [vmem:[%s925_s1 + $0x2f8] sm:$0xff]  ;;  %v138_v6 = vld [vmem:[%s925_s1 + $0x368] sm:$0xff]  ;;  %v155_v7 = vld [vmem:[%s925_s1 + $0x3f0] sm:$0xff] }
  0x19   :  { %212 = vmatpush.msra.mxu1 %v50_v43  ;;  %193 = vmatpush.msra.mxu0 %v33_v45  ;;  %v106_v8 = vld [vmem:[%s925_s1 + $0x268] sm:$0xff]  ;;  %v123_v9 = vld [vmem:[%s925_s1 + $0x2f0] sm:$0xff]  ;;  %v137_v10 = vld [vmem:[%s925_s1 + $0x360] sm:$0xff] }
  0x1a   :  { %253 = vmatpush.msra.mxu3 %v81_v46  ;;  %234 = vmatpush.msra.mxu2 %v64_v48  ;;  %v154_v11 = vld [vmem:[%s925_s1 + $0x3e8] sm:$0xff]  ;;  %v105_v12 = vld [vmem:[%s925_s1 + $0x260] sm:$0xff]  ;;  %v136_v15 = vld [vmem:[%s925_s1 + $0x358] sm:$0xff] }
  0x1b   :  { %213 = vmatpush.msra.mxu1 %v49_v47  ;;  %194 = vmatpush.msra.mxu0 %v32_v49  ;;  %v122_v13 = vld [vmem:[%s925_s1 + $0x2e8] sm:$0xff]  ;;  %v27_v14 = vld [vmem:[%s924_s0] sm:$0xff]  ;;  %v104_v17 = vld [vmem:[%s925_s1 + $0x258] sm:$0xff] }
  0x1c   :  { %254 = vmatpush.msra.mxu3 %v80_v50  ;;  %235 = vmatpush.msra.mxu2 %v63_v52  ;;  %v153_v16 = vld [vmem:[%s925_s1 + $0x3e0] sm:$0xff]  ;;  %163 = vst [vmem:[#allocation1] ss:$4 sm:$0xff] %v27_v14  ;;  %v135_v19 = vld [vmem:[%s925_s1 + $0x350] sm:$0xff]  ;;  %v152_v20 = vld [vmem:[%s925_s1 + $0x3d8] sm:$0xff] }
  0x1d   :  { %214 = vmatpush.msra.mxu1 %v48_v51  ;;  %195 = vmatpush.msra.mxu0 %v31_v53  ;;  %v121_v18 = vld [vmem:[%s925_s1 + $0x2e0] sm:$0xff]  ;;  %v103_v21 = vld [vmem:[%s925_s1 + $0x250] sm:$0xff]  ;;  %v120_v22 = vld [vmem:[%s925_s1 + $0x2d8] sm:$0xff] }
  0x1e   :  { %255 = vmatpush.msra.mxu3 %v79_v54  ;;  %236 = vmatpush.msra.mxu2 %v62_v56  ;;  %v134_v23 = vld [vmem:[%s925_s1 + $0x348] sm:$0xff]  ;;  %v151_v24 = vld [vmem:[%s925_s1 + $0x3d0] sm:$0xff]  ;;  %v133_v28 = vld [vmem:[%s925_s1 + $0x340] sm:$0xff] }
  0x1f   :  { %215 = vmatpush.msra.mxu1 %v47_v55  ;;  %196 = vmatpush.msra.mxu0 %v30_v57  ;;  %v28_v25 = vld [vmem:[%s924_s0 + $0x8] sm:$0xff]  ;;  %v119_v27 = vld [vmem:[%s925_s1 + $0x2d0] sm:$0xff]  ;;  %v101_v30 = vld [vmem:[%s925_s1 + $0x240] sm:$0xff] }
  0x20   :  { %256 = vmatpush.msra.mxu3 %v78_v58  ;;  %237 = vmatpush.msra.mxu2 %v61_v60  ;;  %v102_v26 = vld [vmem:[%s925_s1 + $0x248] sm:$0xff]  ;;  %165 = vst [vmem:[#allocation1 + $0x20] ss:$4 sm:$0xff] %v28_v25  ;;  %v132_v32 = vld [vmem:[%s925_s1 + $0x338] sm:$0xff]  ;;  %v149_v33 = vld [vmem:[%s925_s1 + $0x3c0] sm:$0xff] }
  0x21   :  { %216 = vmatpush.msra.mxu1 %v46_v59  ;;  %197 = vmatpush.msra.mxu0 %v29_v61  ;;  %v150_v29 = vld [vmem:[%s925_s1 + $0x3c8] sm:$0xff]  ;;  %v100_v34 = vld [vmem:[%s925_s1 + $0x238] sm:$0xff]  ;;  %v117_v35 = vld [vmem:[%s925_s1 + $0x2c0] sm:$0xff] }
  0x22   :  { %302 = vmatpush.msrb.mxu2 %v140_v62  ;;  %257 = vmatpush.msra.mxu3 %v77_v63  ;;  %v118_v31 = vld [vmem:[%s925_s1 + $0x2c8] sm:$0xff] }
  0x23   :  { %262 = vmatpush.msrb.mxu0 %v108_v0  ;;  %217 = vmatpush.msra.mxu1 %v45_v3 }
  0x24   :  { %322 = vmatpush.msrb.mxu3 %v156_v1  ;;  %303 = vmatpush.msrb.mxu2 %v139_v2 }
  0x25   :  { %263 = vmatpush.msrb.mxu0 %v107_v4  ;;  %282 = vmatpush.msrb.mxu1 %v124_v5 }
  0x26   :  { %304 = vmatpush.msrb.mxu2 %v138_v6  ;;  %323 = vmatpush.msrb.mxu3 %v155_v7 }
  0x27   :  { %264 = vmatpush.msrb.mxu0 %v106_v8  ;;  %283 = vmatpush.msrb.mxu1 %v123_v9 }
  0x28   :  { %305 = vmatpush.msrb.mxu2 %v137_v10  ;;  %324 = vmatpush.msrb.mxu3 %v154_v11 }
  0x29   :  { %265 = vmatpush.msrb.mxu0 %v105_v12  ;;  %284 = vmatpush.msrb.mxu1 %v122_v13 }
  0x2a   :  { %306 = vmatpush.msrb.mxu2 %v136_v15  ;;  %325 = vmatpush.msrb.mxu3 %v153_v16 }
  0x2b   :  { %266 = vmatpush.msrb.mxu0 %v104_v17  ;;  %285 = vmatpush.msrb.mxu1 %v121_v18 }
  0x2c   :  { %307 = vmatpush.msrb.mxu2 %v135_v19  ;;  %326 = vmatpush.msrb.mxu3 %v152_v20 }
  0x2d   :  { %267 = vmatpush.msrb.mxu0 %v103_v21  ;;  %286 = vmatpush.msrb.mxu1 %v120_v22 }
  0x2e   :  { %308 = vmatpush.msrb.mxu2 %v134_v23  ;;  %327 = vmatpush.msrb.mxu3 %v151_v24 }
  0x2f   :  { %268 = vmatpush.msrb.mxu0 %v102_v26  ;;  %287 = vmatpush.msrb.mxu1 %v119_v27 }
  0x30   :  { %309 = vmatpush.msrb.mxu2 %v133_v28  ;;  %328 = vmatpush.msrb.mxu3 %v150_v29 }
  0x31   :  { %12 = vsyncpa [#allocation3], 0  ;;  %269 = vmatpush.msrb.mxu0 %v101_v30  ;;  %288 = vmatpush.msrb.mxu1 %v118_v31  ;;  %v131_v36 = vld [vmem:[%s925_s1 + $0x330] sm:$0xff]  ;;  %v148_v37 = vld [vmem:[%s925_s1 + $0x3b8] sm:$0xff]  ;;  %vm351_vm0 = vcmask 261120   ;;  %s457_s23 = smov [#allocation2]  }
  0x32   :  { %310 = vmatpush.msrb.mxu2 %v132_v32  ;;  %329 = vmatpush.msrb.mxu3 %v149_v33  ;;  %v99_v38 = vld [vmem:[%s925_s1 + $0x230] sm:$0xff]  ;;  %v116_v39 = vld [vmem:[%s925_s1 + $0x2b8] sm:$0xff]  ;;  %v130_v40 = vld [vmem:[%s925_s1 + $0x328] sm:$0xff]  ;;  %s414_s24 = sshll.u32 %s457_s23, 4  ;;  %s416_s27 = sshll.u32 %s931_s7, 4  ;;  %vm407_vm1 = vcmask 74752   ;;  %s415_s24 = int_to_ptr.vmem [resolvable:$true] %s414_s24  ;;  %s417_s27 = int_to_ptr.hbm [resolvable:$true] %s416_s27 }
  0x33   :  { %270 = vmatpush.msrb.mxu0 %v100_v34  ;;  %289 = vmatpush.msrb.mxu1 %v117_v35  ;;  %v147_v41 = vld [vmem:[%s925_s1 + $0x3b0] sm:$0xff]  ;;  %v98_v42 = vld [vmem:[%s925_s1 + $0x228] sm:$0xff]  ;;  %v129_v44 = vld [vmem:[%s925_s1 + $0x320] sm:$0xff] }
  0x34   :  { %311 = vmatpush.msrb.mxu2 %v131_v36  ;;  %330 = vmatpush.msrb.mxu3 %v148_v37  ;;  %v115_v43 = vld [vmem:[%s925_s1 + $0x2b0] sm:$0xff]  ;;  %v146_v45 = vld [vmem:[%s925_s1 + $0x3a8] sm:$0xff]  ;;  %v97_v47 = vld [vmem:[%s925_s1 + $0x220] sm:$0xff] }
  0x35   :  { %271 = vmatpush.msrb.mxu0 %v99_v38  ;;  %290 = vmatpush.msrb.mxu1 %v116_v39  ;;  %v168_v46 = vld.sshfl [vmem:[#allocation1 + $0x10] sm:$0xff pattern:$0x73625140]  ;;  %v114_v48 = vld [vmem:[%s925_s1 + $0x2a8] sm:$0xff]  ;;  %v128_v49 = vld [vmem:[%s925_s1 + $0x318] sm:$0xff] }
  0x36   :  { %312 = vmatpush.msrb.mxu2 %v130_v40  ;;  %331 = vmatpush.msrb.mxu3 %v147_v41  ;;  %v145_v50 = vld [vmem:[%s925_s1 + $0x3a0] sm:$0xff]  ;;  %v169_v52 = vld.sshfl [vmem:[#allocation1 + $0x18] sm:$0xff pattern:$0x73625140]  ;;  %v127_v55 = vld [vmem:[%s925_s1 + $0x310] sm:$0xff] }
  0x37   :  { %272 = vmatpush.msrb.mxu0 %v98_v42  ;;  %291 = vmatpush.msrb.mxu1 %v115_v43  ;;  %v166_v51 = vld.sshfl [vmem:[#allocation1] sm:$0xff pattern:$0x73625140]  ;;  %v96_v53 = vld [vmem:[%s925_s1 + $0x218] sm:$0xff]  ;;  %v95_v58 = vld [vmem:[%s925_s1 + $0x210] sm:$0xff] }
  0x38   :  { %313 = vmatpush.msrb.mxu2 %v129_v44  ;;  %332 = vmatpush.msrb.mxu3 %v146_v45  ;;  %v113_v54 = vld [vmem:[%s925_s1 + $0x2a0] sm:$0xff]  ;;  %v144_v56 = vld [vmem:[%s925_s1 + $0x398] sm:$0xff]  ;;  %v167_v57 = vld.sshfl [vmem:[#allocation1 + $0x8] sm:$0xff pattern:$0x73625140] }
  0x39   :  { %238 = vmatmul.f32.vlgmr.msra.gmra.mxu2 %v168_v46  ;;  %273 = vmatpush.msrb.mxu0 %v97_v47  ;;  %v112_v59 = vld [vmem:[%s925_s1 + $0x298] sm:$0xff]  ;;  %v126_v60 = vld [vmem:[%s925_s1 + $0x308] sm:$0xff]  ;;  %v143_v61 = vld [vmem:[%s925_s1 + $0x390] sm:$0xff] }
  0x3a   :  { %292 = vmatpush.msrb.mxu1 %v114_v48  ;;  %314 = vmatpush.msrb.mxu2 %v128_v49  ;;  %v94_v62 = vld [vmem:[%s925_s1 + $0x208] sm:$0xff]  ;;  %v111_v63 = vld [vmem:[%s925_s1 + $0x290] sm:$0xff]  ;;  %v125_v0 = vld [vmem:[%s925_s1 + $0x300] sm:$0xff] }
  0x3b   :  { %333 = vmatpush.msrb.mxu3 %v145_v50  ;;  %198 = vmatmul.f32.vlgmr.msra.gmra.mxu0 %v166_v51  ;;  %v142_v1 = vld [vmem:[%s925_s1 + $0x388] sm:$0xff]  ;;  %v172_v2 = vld.sshfl [vmem:[#allocation1 + $0x30] sm:$0xff pattern:$0x73625140]  ;;  %v93_v3 = vld [vmem:[%s925_s1 + $0x200] sm:$0xff] }
  0x3c   :  { %258 = vmatmul.f32.vlgmr.msra.gmra.mxu3 %v169_v52  ;;  %274 = vmatpush.msrb.mxu0 %v96_v53  ;;  %v110_v4 = vld [vmem:[%s925_s1 + $0x288] sm:$0xff]  ;;  %v141_v5 = vld [vmem:[%s925_s1 + $0x380] sm:$0xff]  ;;  %v173_v7 = vld.sshfl [vmem:[#allocation1 + $0x38] sm:$0xff pattern:$0x73625140] }
  0x3d   :  { %293 = vmatpush.msrb.mxu1 %v113_v54  ;;  %315 = vmatpush.msrb.mxu2 %v127_v55  ;;  %v170_v6 = vld.sshfl [vmem:[#allocation1 + $0x20] sm:$0xff pattern:$0x73625140]  ;;  %v171_v9 = vld.sshfl [vmem:[#allocation1 + $0x28] sm:$0xff pattern:$0x73625140] }
  0x3e   :  { %334 = vmatpush.msrb.mxu3 %v144_v56  ;;  %218 = vmatmul.f32.vlgmr.msra.gmra.mxu1 %v167_v57  ;;  %v109_v8 = vld [vmem:[%s925_s1 + $0x280] sm:$0xff]  ;;  %v346_v10 = vld [vmem:[%s926_s2 + $0x18] sm:$0xff]  ;;  %v345_v11 = vld [vmem:[%s926_s2 + $0x10] sm:$0xff] }
  0x3f   :  { %275 = vmatpush.msrb.mxu0 %v95_v58  ;;  %294 = vmatpush.msrb.mxu1 %v112_v59  ;;  %v344_v12 = vld [vmem:[%s926_s2 + $0x8] sm:$0xff]  ;;  %v343_v13 = vld [vmem:[%s926_s2] sm:$0xff]  ;;  %v379_v14 = vld [vmem:[%s927_s3 + $0x18] sm:$0xff] }
  0x40   :  { %316 = vmatpush.msrb.mxu2 %v126_v60  ;;  %335 = vmatpush.msrb.mxu3 %v143_v61  ;;  %v378_v15 = vld [vmem:[%s927_s3 + $0x10] sm:$0xff]  ;;  %v428_v16 = vld [vmem:[%s928_s4] ss:$0 sm:$0xff]  ;;  %v377_v34 = vld [vmem:[%s927_s3 + $0x8] sm:$0xff] }
  0x41   :  { %276 = vmatpush.msrb.mxu0 %v94_v62  ;;  %295 = vmatpush.msrb.mxu1 %v111_v63  ;;  %v376_v35 = vld [vmem:[%s927_s3] sm:$0xff] }
  0x42   :  { %317 = vmatpush.msrb.mxu2 %v125_v0  ;;  %336 = vmatpush.msrb.mxu3 %v142_v1  ;;  %v429_v36 = vld [vmem:[%s929_s5] ss:$0 sm:$0xff] }
  0x43   :  { %318 = vmatmul.f32.vlgmr.msrb.gmra.mxu2 %v172_v2  ;;  %277 = vmatpush.msrb.mxu0 %v93_v3  ;;  %v430_v40 = vld [vmem:[%s930_s6] ss:$0 sm:$0xff] }
  0x44   :  { %296 = vmatpush.msrb.mxu1 %v110_v4  ;;  %337 = vmatpush.msrb.mxu3 %v141_v5 }
  0x45   :  { %278 = vmatmul.f32.vlgmr.msrb.gmra.mxu0 %v170_v6  ;;  %338 = vmatmul.f32.vlgmr.msrb.gmra.mxu3 %v173_v7 }
  0x46   :  { %297 = vmatpush.msrb.mxu1 %v109_v8  ;;  %367 = vmatpush.msra.mxu0 %v346_v10 }
  0x47   :  { %298 = vmatmul.f32.vlgmr.msrb.gmra.mxu1 %v171_v9 }
  0x48   :  { %368 = vmatpush.msra.mxu0 %v345_v11  ;;  %399 = vmatpush.msra.mxu1 %v379_v14 }
  0x4a   :  { %369 = vmatpush.msra.mxu0 %v344_v12  ;;  %400 = vmatpush.msra.mxu1 %v378_v15 }
  0x4c   :  { %370 = vmatpush.msra.mxu0 %v343_v13  ;;  %401 = vmatpush.msra.mxu1 %v377_v34 }
  0x4e   :  { %402 = vmatpush.msra.mxu1 %v376_v35 }
  0xb8   :  { %v199_v17 = vpop.f32.mrf.mxu0 }
  0xb9   :  { %v200_v18 = vadd.f32 %v428_v16, %v199_v17 }
  0xbb   :  { %v219_v19 = vpop.f32.mrf.mxu1 }
  0xbc   :  { %v220_v20 = vadd.f32 %v219_v19, %v200_v18  ;;  %v239_v21 = vpop.f32.mrf.mxu2 }
  0xbe   :  { %v240_v22 = vadd.f32 %v239_v21, %v220_v20 }
  0xbf   :  { %v259_v23 = vpop.f32.mrf.mxu3 }
  0xc0   :  { %v260_v24 = vadd.f32 %v259_v23, %v240_v22 }
  0xc2   :  { %v279_v25 = vpop.f32.mrf.mxu0 }
  0xc3   :  { %v280_v26 = vadd.f32 %v279_v25, %v260_v24 }
  0xc4   :  { %v299_v27 = vpop.f32.mrf.mxu1 }
  0xc5   :  { %v300_v28 = vadd.f32 %v299_v27, %v280_v26 }
  0xc6   :  { %v319_v29 = vpop.f32.mrf.mxu2 }
  0xc7   :  { %v320_v30 = vadd.f32 %v319_v29, %v300_v28 }
  0xc8   :  { %v339_v31 = vpop.f32.mrf.mxu3 }
  0xc9   :  { %v340_v32 = vadd.f32 %v339_v31, %v320_v30 }
  0xcb   :  { %v342_v33 = vmax.f32 %v340_v32, 0.0 }
  0xcd   :  { %425 = vmatmul.msk.f32.vlgmr.msra.gmra.mxu0 %vm351_vm0, %v342_v33 }
 0x14a   :  { %v372_v37 = vpop.f32.mrf.mxu0 }
 0x14b   :  { %v373_v38 = vadd.f32 %v429_v36, %v372_v37 }
 0x14d   :  { %v375_v39 = vmax.f32 %v373_v38, 0.0 }
 0x14f   :  { %426 = vmatmul.msk.f32.vlgmr.msra.gmra.mxu1 %vm351_vm0, %v375_v39 }
 0x1cc   :  { %v404_v41 = vpop.f32.mrf.mxu1 }
 0x1cd   :  { %v405_v42 = vadd.f32 %v430_v40, %v404_v41 }
 0x1cf   :  { %408 = vst.msk [vmem:[#allocation2] sm:$0x3] %vm407_vm1, %v405_v42 }
 0x1d0   :  { %419 = dma.vmem_to_hbm [thread:$0]  %s415_s24, 32, %s417_s27, [#allocation3]  }
 0x1d1   :  { %455 = dma.done.wait [#allocation3], 32  }
 0x1d2   :  { %456 = vsyncadd [#allocation3], 4294967264 }
 0x1d3   :  { %424 = vsyncpa [#allocation3], 1 }

</bundles_post_ra>
